<compile_context>
chip_gen: v6e
topology: v6e:2x2x1
jax: 0.10.0
libtpu: 0.0.40
codegen_flags: <defaults>
</compile_context>

<pallas_src>
import functools

import jax
import jax.numpy as jnp
from jax import lax
from jax.experimental import pallas as pl
from jax.experimental.pallas import tpu as pltpu

EPS = 1e-12  # torch.nn.functional.normalize default eps (clamp on the norm)


def _round_up(n, m):
    return ((n + m - 1) // m) * m


def _plane_projection2_kernel(x_ref, catcn_ref, colstats_ref, wa1_ref, wa2_ref,
                              wa3_ref, pT_ref, wq_ref, o_ref, *,
                              o_true, o_pad, i_pad):
    f32 = jnp.float32
    x = x_ref[...]                                                  # (TB, Ip) f32

    # ---- stage 1: per-(b,o) scalars via one fused MXU pass x @ [c | nn] ----
    r = jnp.dot(x, catcn_ref[...], preferred_element_type=f32)      # (TB, 2*Op)
    xc, xnn = r[:, :o_pad], r[:, o_pad:]
    xsq = jnp.sum(x * x, axis=1, keepdims=True)                     # (TB, 1)
    csq = colstats_ref[0:1, :]                                      # (1, Op)
    cnn = colstats_ref[1:2, :]                                      # (1, Op)
    s1sq = xsq + 2.0 * xc + csq                                     # ||x[b]+c[:,o]||^2
    s1inv = lax.rsqrt(jnp.maximum(s1sq, EPS * EPS))                 # == 1/max(||.||, eps)
    if o_true != o_pad:  # static: zero the zero-padded output columns
        o_ids = lax.broadcasted_iota(jnp.int32, s1inv.shape, 1)
        s1inv = jnp.where(o_ids < o_true, s1inv, 0.0)
    cos = s1inv * (xnn + cnn)
    a1 = s1inv * s1inv
    a2 = s1inv * cos
    a3 = cos * cos

    # ---- stage 2: per-(b,i) norm over O without materializing (B,I,O) ----
    u1 = jnp.dot(a1, wa1_ref[...], preferred_element_type=f32)      # (TB, 2*Ip)
    u2 = jnp.dot(a2, wa2_ref[...], preferred_element_type=f32)      # (TB, 2*Ip)
    t5 = jnp.dot(a3, wa3_ref[...], preferred_element_type=f32)      # (TB, Ip)
    t1, t2 = u1[:, :i_pad], u1[:, i_pad:]
    t3, t4 = u2[:, :i_pad], u2[:, i_pad:]
    sum_a1 = jnp.sum(a1, axis=1, keepdims=True)                     # (TB, 1)
    n2sq = x * x * sum_a1 + 2.0 * x * (t1 - t3) + (t2 - 2.0 * t4 + t5)
    q = lax.rsqrt(jnp.maximum(n2sq, EPS * EPS))                     # (TB, Ip)

    # ---- stage 3: final contraction over in_features ----
    r1 = jnp.dot(x * q, pT_ref[...], preferred_element_type=f32)    # (TB, Op)
    r23 = jnp.dot(q, wq_ref[...], preferred_element_type=f32)       # (TB, 2*Op)
    r2, r3 = r23[:, :o_pad], r23[:, o_pad:]
    o_ref[...] = (s1inv * (r1 + r2) - cos * r3).astype(o_ref.dtype)


def plane_projection2(x, normal, center, plane, *, tile_b=128):
    B, I = x.shape
    O = normal.shape[0]
    assert normal.shape == (O, I) and plane.shape == (O, I)
    assert center.shape == (I, O)

    f32 = jnp.float32
    x32 = x.astype(f32)
    normal = normal.astype(f32)
    center = center.astype(f32)
    plane = plane.astype(f32)

    # ---- parameter-only preprocessing (batch independent, O(I*O)) ----
    # nn = F.normalize(normal, dim=0).T
    col = jnp.sqrt(jnp.sum(normal * normal, axis=0, keepdims=True))      # (1, I)
    nn = (normal / jnp.maximum(col, EPS)).T                              # (I, O)

    def _rownorm(a):
        return a / jnp.maximum(
            jnp.sqrt(jnp.sum(a * a, axis=1, keepdims=True)), EPS)

    # p = F.normalize(plane - normal * <plane_hat, normal_hat>_row, dim=1)
    cos_pn = jnp.sum(_rownorm(plane) * _rownorm(normal), axis=1, keepdims=True)
    pT = _rownorm(plane - normal * cos_pn).T                             # (I, O)
    c = center                                                           # (I, O)

    # ---- lane-dense zero padding (last dims -> multiples of 128) ----
    i_pad = _round_up(I, 128)
    o_pad = _round_up(O, 128)
    tile_b = _round_up(max(8, min(tile_b, _round_up(B, 8))), 8)
    b_pad = _round_up(B, tile_b)

    def pad_io(a):
        return jnp.pad(a, ((0, i_pad - I), (0, o_pad - O)))

    c_p, nn_p, pT_p = pad_io(c), pad_io(nn), pad_io(pT)
    x_p = jnp.pad(x32, ((0, b_pad - B), (0, i_pad - I)))

    # Fused right-hand operands, hoisted out of the batch loop (standard MXU
    # orientation: contraction dim is always the RHS leading dim -> no
    # in-kernel transposes).
    catcn = jnp.concatenate([c_p, nn_p], axis=1)                     # (Ip, 2*Op)
    colstats = jnp.stack([jnp.sum(c_p * c_p, axis=0),
                          jnp.sum(c_p * nn_p, axis=0)], axis=0)      # (2, Op)
    wa1 = jnp.concatenate([c_p.T, (c_p * c_p).T], axis=1)            # (Op, 2*Ip)
    wa2 = jnp.concatenate([nn_p.T, (c_p * nn_p).T], axis=1)          # (Op, 2*Ip)
    wa3 = (nn_p * nn_p).T                                            # (Op, Ip)
    wq = jnp.concatenate([c_p * pT_p, nn_p * pT_p], axis=1)          # (Ip, 2*Op)

    grid = (b_pad // tile_b,)
    kernel = functools.partial(_plane_projection2_kernel,
                               o_true=O, o_pad=o_pad, i_pad=i_pad)

    def _full(a):  # parameters: whole array resident, reused every grid step
        return pl.BlockSpec(a.shape, lambda b: (0,) * a.ndim)

    flops = 20 * b_pad * i_pad * o_pad
    bytes_accessed = 4 * (x_p.size + b_pad * o_pad + catcn.size + colstats.size
                          + wa1.size + wa2.size + wa3.size + pT_p.size + wq.size)
    cost = pl.CostEstimate(flops=flops,
                           transcendentals=b_pad * (i_pad + o_pad),
                           bytes_accessed=bytes_accessed)

    # TODO(synk): for very large in/out_features also tile the O axis (needs a
    # two-pass reduction for the per-(b,i) norm); here the (I_pad, O_pad)
    # parameter operands stay fully resident in VMEM.
    out = pl.pallas_call(
        kernel,
        out_shape=jax.ShapeDtypeStruct((b_pad, o_pad), f32),
        grid=grid,
        in_specs=[
            pl.BlockSpec((tile_b, i_pad), lambda b: (b, 0)),   # x batch tile
            _full(catcn), _full(colstats), _full(wa1), _full(wa2),
            _full(wa3), _full(pT_p), _full(wq),
        ],
        out_specs=pl.BlockSpec((tile_b, o_pad), lambda b: (b, 0)),
        compiler_params=pltpu.CompilerParams(
            dimension_semantics=("parallel",)),
        cost_estimate=cost,
    )(x_p, catcn, colstats, wa1, wa2, wa3, pT_p, wq)

    return out[:B, :O].astype(x.dtype)


def reference_plane_projection2(x, normal, center, plane):
    """Literal transcription of the PyTorch forward (materializes (B, I, O))."""
    def l2n(a, axis):
        n = jnp.sqrt(jnp.sum(a * a, axis=axis, keepdims=True))
        return a / jnp.maximum(n, EPS)

    xx = x[:, :, None] + center[None, :, :]                       # (B, I, O)
    xx = l2n(xx, axis=1)                                          # over I
    nn = l2n(normal, axis=0).T[None, :, :]                        # (1, I, O)
    cos_th = jnp.sum(xx * nn, axis=1, keepdims=True)              # (B, 1, O)
    xx = xx - cos_th * nn
    cos_pn = jnp.sum(l2n(plane, axis=1) * l2n(normal, axis=1),
                     axis=1, keepdims=True)                       # (O, 1)
    p = l2n(plane - normal * cos_pn, axis=1)                      # (O, I)
    xx = l2n(xx, axis=2)                                          # over O
    return jnp.sum(xx * p.T[None, :, :], axis=1)                  # (B, O)


def xavier_normal(key, shape):
    # nn.init.xavier_normal_ on a 2-D tensor: std = sqrt(2/(fan_in+fan_out))
    fan_out, fan_in = shape
    std = jnp.sqrt(2.0 / (fan_in + fan_out))
    return std * jax.random.normal(key, shape, jnp.float32)


if __name__ == "__main__":
    batch, in_features, out_features = 16, 32, 16

    key = jax.random.PRNGKey(0)
    k_x, k_n, k_c, k_p = jax.random.split(key, 4)

    x = jax.random.normal(k_x, (batch, in_features), jnp.float32)
    normal = xavier_normal(k_n, (out_features, in_features))
    center = xavier_normal(k_c, (in_features, out_features))
    plane = xavier_normal(k_p, (out_features, in_features))

    out = plane_projection2(x, normal, center, plane, tile_b=8)  # grid=(2,)
    out = jax.block_until_ready(out)

    ref = reference_plane_projection2(x, normal, center, plane)
    assert out.shape == (batch, out_features)
    max_err = float(jnp.max(jnp.abs(out - ref)))
    assert jnp.allclose(out, ref, atol=1e-4, rtol=1e-4), (
        f"max abs err = {max_err}")

    print("KERNEL_OK")
</pallas_src>

<mosaic_0001>
module attributes {stable_mosaic.version = 11 : i64} {
  func.func @_plane_projection2_kernel(%arg0: i32, %arg1: memref<8x128xf32, #tpu.memory_space<vmem>>, %arg2: memref<128x256xf32, #tpu.memory_space<vmem>>, %arg3: memref<2x128xf32, #tpu.memory_space<vmem>>, %arg4: memref<128x256xf32, #tpu.memory_space<vmem>>, %arg5: memref<128x256xf32, #tpu.memory_space<vmem>>, %arg6: memref<128x128xf32, #tpu.memory_space<vmem>>, %arg7: memref<128x128xf32, #tpu.memory_space<vmem>>, %arg8: memref<128x256xf32, #tpu.memory_space<vmem>>, %arg9: memref<8x128xf32, #tpu.memory_space<vmem>>) attributes {dimension_semantics = [#tpu.dimension_semantics<parallel>], iteration_bounds = array<i64: 2>, scalar_prefetch = 0 : i64, scratch_operands = 0 : i64, tpu.core_type = #tpu.core_type<tc>, window_params = [{transform_indices = @transform_0, window_bounds = array<i64: 8, 128>}, {pipeline_mode = #tpu.pipeline_mode<synchronous>, transform_indices = @transform_1, window_bounds = array<i64: 128, 256>}, {pipeline_mode = #tpu.pipeline_mode<synchronous>, transform_indices = @transform_2, window_bounds = array<i64: 2, 128>}, {pipeline_mode = #tpu.pipeline_mode<synchronous>, transform_indices = @transform_3, window_bounds = array<i64: 128, 256>}, {pipeline_mode = #tpu.pipeline_mode<synchronous>, transform_indices = @transform_4, window_bounds = array<i64: 128, 256>}, {pipeline_mode = #tpu.pipeline_mode<synchronous>, transform_indices = @transform_5, window_bounds = array<i64: 128, 128>}, {pipeline_mode = #tpu.pipeline_mode<synchronous>, transform_indices = @transform_6, window_bounds = array<i64: 128, 128>}, {pipeline_mode = #tpu.pipeline_mode<synchronous>, transform_indices = @transform_7, window_bounds = array<i64: 128, 256>}, {transform_indices = @transform_8, window_bounds = array<i64: 8, 128>}]} {
    %c0 = arith.constant 0 : index
    %c0_0 = arith.constant 0 : index
    %0 = vector.load %arg1[%c0, %c0_0] : memref<8x128xf32, #tpu.memory_space<vmem>>, vector<8x128xf32>
    %c0_1 = arith.constant 0 : index
    %c0_2 = arith.constant 0 : index
    %1 = vector.load %arg2[%c0_1, %c0_2] : memref<128x256xf32, #tpu.memory_space<vmem>>, vector<128x256xf32>
    %cst = arith.constant dense<0.000000e+00> : vector<8x256xf32>
    %2 = tpu.matmul %0, %1, %cst {dimension_numbers = #tpu.dot_dimension_numbers<[1], [0], [0], [1], [0, 0, 1, 1], [], []>} : vector<8x128xf32>, vector<128x256xf32>, vector<8x256xf32> -> vector<8x256xf32>
    %3 = vector.extract_strided_slice %2 {offsets = [0, 0], sizes = [8, 128], strides = [1, 1]} : vector<8x256xf32> to vector<8x128xf32>
    %4 = vector.extract_strided_slice %2 {offsets = [0, 128], sizes = [8, 128], strides = [1, 1]} : vector<8x256xf32> to vector<8x128xf32>
    %5 = arith.mulf %0, %0 : vector<8x128xf32>
    %cst_3 = arith.constant dense<0.000000e+00> : vector<8xf32>
    %6 = vector.multi_reduction <add>, %5, %cst_3 [1] : vector<8x128xf32> to vector<8xf32>
    %7 = vector.shape_cast %6 : vector<8xf32> to vector<8x1xf32>
    %c0_4 = arith.constant 0 : index
    %c0_5 = arith.constant 0 : index
    %8 = vector.load %arg3[%c0_4, %c0_5] : memref<2x128xf32, #tpu.memory_space<vmem>>, vector<1x128xf32>
    %c1 = arith.constant 1 : index
    %c0_6 = arith.constant 0 : index
    %9 = vector.load %arg3[%c1, %c0_6] : memref<2x128xf32, #tpu.memory_space<vmem>>, vector<1x128xf32>
    %cst_7 = arith.constant 2.000000e+00 : f32
    %10 = vector.broadcast %cst_7 : f32 to vector<8x128xf32>
    %11 = arith.mulf %10, %3 : vector<8x128xf32>
    %12 = vector.broadcast %7 : vector<8x1xf32> to vector<8x128xf32>
    %13 = arith.addf %12, %11 : vector<8x128xf32>
    %14 = vector.broadcast %8 : vector<1x128xf32> to vector<8x128xf32>
    %15 = arith.addf %13, %14 : vector<8x128xf32>
    %cst_8 = arith.constant 1.000000e-24 : f32
    %16 = vector.broadcast %cst_8 : f32 to vector<8x128xf32>
    %17 = arith.maximumf %15, %16 : vector<8x128xf32>
    %18 = math.rsqrt %17 : vector<8x128xf32>
    %19 = tpu.iota {dimensions = array<i32: 1>} : vector<8x128xi32>
    %c16_i32 = arith.constant 16 : i32
    %20 = vector.broadcast %c16_i32 : i32 to vector<8x128xi32>
    %21 = arith.cmpi slt, %19, %20 : vector<8x128xi32>
    %cst_9 = arith.constant 0.000000e+00 : f32
    %22 = vector.broadcast %cst_9 : f32 to vector<8x128xf32>
    %23 = arith.select %21, %18, %22 : vector<8x128xi1>, vector<8x128xf32>
    %24 = vector.broadcast %9 : vector<1x128xf32> to vector<8x128xf32>
    %25 = arith.addf %4, %24 : vector<8x128xf32>
    %26 = arith.mulf %23, %25 : vector<8x128xf32>
    %27 = arith.mulf %23, %23 : vector<8x128xf32>
    %28 = arith.mulf %23, %26 : vector<8x128xf32>
    %29 = arith.mulf %26, %26 : vector<8x128xf32>
    %c0_10 = arith.constant 0 : index
    %c0_11 = arith.constant 0 : index
    %30 = vector.load %arg4[%c0_10, %c0_11] : memref<128x256xf32, #tpu.memory_space<vmem>>, vector<128x256xf32>
    %cst_12 = arith.constant dense<0.000000e+00> : vector<8x256xf32>
    %31 = tpu.matmul %27, %30, %cst_12 {dimension_numbers = #tpu.dot_dimension_numbers<[1], [0], [0], [1], [0, 0, 1, 1], [], []>} : vector<8x128xf32>, vector<128x256xf32>, vector<8x256xf32> -> vector<8x256xf32>
    %c0_13 = arith.constant 0 : index
    %c0_14 = arith.constant 0 : index
    %32 = vector.load %arg5[%c0_13, %c0_14] : memref<128x256xf32, #tpu.memory_space<vmem>>, vector<128x256xf32>
    %cst_15 = arith.constant dense<0.000000e+00> : vector<8x256xf32>
    %33 = tpu.matmul %28, %32, %cst_15 {dimension_numbers = #tpu.dot_dimension_numbers<[1], [0], [0], [1], [0, 0, 1, 1], [], []>} : vector<8x128xf32>, vector<128x256xf32>, vector<8x256xf32> -> vector<8x256xf32>
    %c0_16 = arith.constant 0 : index
    %c0_17 = arith.constant 0 : index
    %34 = vector.load %arg6[%c0_16, %c0_17] : memref<128x128xf32, #tpu.memory_space<vmem>>, vector<128x128xf32>
    %cst_18 = arith.constant dense<0.000000e+00> : vector<8x128xf32>
    %35 = tpu.matmul %29, %34, %cst_18 {dimension_numbers = #tpu.dot_dimension_numbers<[1], [0], [0], [1], [0, 0, 1, 1], [], []>} : vector<8x128xf32>, vector<128x128xf32>, vector<8x128xf32> -> vector<8x128xf32>
    %36 = vector.extract_strided_slice %31 {offsets = [0, 0], sizes = [8, 128], strides = [1, 1]} : vector<8x256xf32> to vector<8x128xf32>
    %37 = vector.extract_strided_slice %31 {offsets = [0, 128], sizes = [8, 128], strides = [1, 1]} : vector<8x256xf32> to vector<8x128xf32>
    %38 = vector.extract_strided_slice %33 {offsets = [0, 0], sizes = [8, 128], strides = [1, 1]} : vector<8x256xf32> to vector<8x128xf32>
    %39 = vector.extract_strided_slice %33 {offsets = [0, 128], sizes = [8, 128], strides = [1, 1]} : vector<8x256xf32> to vector<8x128xf32>
    %cst_19 = arith.constant dense<0.000000e+00> : vector<8xf32>
    %40 = vector.multi_reduction <add>, %27, %cst_19 [1] : vector<8x128xf32> to vector<8xf32>
    %41 = vector.shape_cast %40 : vector<8xf32> to vector<8x1xf32>
    %42 = arith.mulf %0, %0 : vector<8x128xf32>
    %43 = vector.broadcast %41 : vector<8x1xf32> to vector<8x128xf32>
    %44 = arith.mulf %42, %43 : vector<8x128xf32>
    %cst_20 = arith.constant 2.000000e+00 : f32
    %45 = vector.broadcast %cst_20 : f32 to vector<8x128xf32>
    %46 = arith.mulf %45, %0 : vector<8x128xf32>
    %47 = arith.subf %36, %38 : vector<8x128xf32>
    %48 = arith.mulf %46, %47 : vector<8x128xf32>
    %49 = arith.addf %44, %48 : vector<8x128xf32>
    %cst_21 = arith.constant 2.000000e+00 : f32
    %50 = vector.broadcast %cst_21 : f32 to vector<8x128xf32>
    %51 = arith.mulf %50, %39 : vector<8x128xf32>
    %52 = arith.subf %37, %51 : vector<8x128xf32>
    %53 = arith.addf %52, %35 : vector<8x128xf32>
    %54 = arith.addf %49, %53 : vector<8x128xf32>
    %cst_22 = arith.constant 1.000000e-24 : f32
    %55 = vector.broadcast %cst_22 : f32 to vector<8x128xf32>
    %56 = arith.maximumf %54, %55 : vector<8x128xf32>
    %57 = math.rsqrt %56 : vector<8x128xf32>
    %58 = arith.mulf %0, %57 : vector<8x128xf32>
    %c0_23 = arith.constant 0 : index
    %c0_24 = arith.constant 0 : index
    %59 = vector.load %arg7[%c0_23, %c0_24] : memref<128x128xf32, #tpu.memory_space<vmem>>, vector<128x128xf32>
    %cst_25 = arith.constant dense<0.000000e+00> : vector<8x128xf32>
    %60 = tpu.matmul %58, %59, %cst_25 {dimension_numbers = #tpu.dot_dimension_numbers<[1], [0], [0], [1], [0, 0, 1, 1], [], []>} : vector<8x128xf32>, vector<128x128xf32>, vector<8x128xf32> -> vector<8x128xf32>
    %c0_26 = arith.constant 0 : index
    %c0_27 = arith.constant 0 : index
    %61 = vector.load %arg8[%c0_26, %c0_27] : memref<128x256xf32, #tpu.memory_space<vmem>>, vector<128x256xf32>
    %cst_28 = arith.constant dense<0.000000e+00> : vector<8x256xf32>
    %62 = tpu.matmul %57, %61, %cst_28 {dimension_numbers = #tpu.dot_dimension_numbers<[1], [0], [0], [1], [0, 0, 1, 1], [], []>} : vector<8x128xf32>, vector<128x256xf32>, vector<8x256xf32> -> vector<8x256xf32>
    %63 = vector.extract_strided_slice %62 {offsets = [0, 0], sizes = [8, 128], strides = [1, 1]} : vector<8x256xf32> to vector<8x128xf32>
    %64 = vector.extract_strided_slice %62 {offsets = [0, 128], sizes = [8, 128], strides = [1, 1]} : vector<8x256xf32> to vector<8x128xf32>
    %65 = arith.addf %60, %63 : vector<8x128xf32>
    %66 = arith.mulf %23, %65 : vector<8x128xf32>
    %67 = arith.mulf %26, %64 : vector<8x128xf32>
    %68 = arith.subf %66, %67 : vector<8x128xf32>
    %c0_29 = arith.constant 0 : index
    %c0_30 = arith.constant 0 : index
    %69 = vector.load %arg9[%c0_29, %c0_30] : memref<8x128xf32, #tpu.memory_space<vmem>>, vector<8x128xf32>
    tpu.vector_store %arg9[%c0_29, %c0_30], %68 {strides = array<i32>} : memref<8x128xf32, #tpu.memory_space<vmem>>, vector<8x128xf32>,
    return
  }
  func.func @transform_0(%arg0: i32) -> (i32, i32) {
    %c0_i32 = arith.constant 0 : i32
    %c0_i32_0 = arith.constant 0 : i32
    return %arg0, %c0_i32 : i32, i32
  }
  func.func @transform_1(%arg0: i32) -> (i32, i32) {
    %c0_i32 = arith.constant 0 : i32
    %c0_i32_0 = arith.constant 0 : i32
    %c0_i32_1 = arith.constant 0 : i32
    return %c0_i32, %c0_i32_0 : i32, i32
  }
  func.func @transform_2(%arg0: i32) -> (i32, i32) {
    %c0_i32 = arith.constant 0 : i32
    %c0_i32_0 = arith.constant 0 : i32
    %c0_i32_1 = arith.constant 0 : i32
    return %c0_i32, %c0_i32_0 : i32, i32
  }
  func.func @transform_3(%arg0: i32) -> (i32, i32) {
    %c0_i32 = arith.constant 0 : i32
    %c0_i32_0 = arith.constant 0 : i32
    %c0_i32_1 = arith.constant 0 : i32
    return %c0_i32, %c0_i32_0 : i32, i32
  }
  func.func @transform_4(%arg0: i32) -> (i32, i32) {
    %c0_i32 = arith.constant 0 : i32
    %c0_i32_0 = arith.constant 0 : i32
    %c0_i32_1 = arith.constant 0 : i32
    return %c0_i32, %c0_i32_0 : i32, i32
  }
  func.func @transform_5(%arg0: i32) -> (i32, i32) {
    %c0_i32 = arith.constant 0 : i32
    %c0_i32_0 = arith.constant 0 : i32
    %c0_i32_1 = arith.constant 0 : i32
    return %c0_i32, %c0_i32_0 : i32, i32
  }
  func.func @transform_6(%arg0: i32) -> (i32, i32) {
    %c0_i32 = arith.constant 0 : i32
    %c0_i32_0 = arith.constant 0 : i32
    %c0_i32_1 = arith.constant 0 : i32
    return %c0_i32, %c0_i32_0 : i32, i32
  }
  func.func @transform_7(%arg0: i32) -> (i32, i32) {
    %c0_i32 = arith.constant 0 : i32
    %c0_i32_0 = arith.constant 0 : i32
    %c0_i32_1 = arith.constant 0 : i32
    return %c0_i32, %c0_i32_0 : i32, i32
  }
  func.func @transform_8(%arg0: i32) -> (i32, i32) {
    %c0_i32 = arith.constant 0 : i32
    %c0_i32_0 = arith.constant 0 : i32
    return %arg0, %c0_i32 : i32, i32
  }
}

</mosaic_0001>

<bundles_post_ra>
// kernel: tpu_custom_call.1
= control target key start
LH: loop header
LB: loop body
LE: loop exit
PB: predicated region body
PF: predicated region fallthrough
CT: control target
= control target key end

     0   :  { %s2049_s0 = inlined_call_operand.hbm [shape: f32[16,128], index: 0, kind: input, shape index: {}]   ;;  %s2050_s1 = inlined_call_operand.hbm [shape: f32[128,256], index: 1, kind: input, shape index: {}]   ;;  %s2051_s2 = inlined_call_operand.vmem [shape: f32[2,128], index: 2, kind: input, shape index: {}]   ;;  %s2052_s3 = inlined_call_operand.hbm [shape: f32[128,256], index: 3, kind: input, shape index: {}]   ;;  %s2053_s4 = inlined_call_operand.hbm [shape: f32[128,256], index: 4, kind: input, shape index: {}]   ;;  %s2054_s5 = inlined_call_operand.hbm [shape: f32[128,128], index: 5, kind: input, shape index: {}]   ;;  %s2055_s6 = inlined_call_operand.hbm [shape: f32[128,128], index: 6, kind: input, shape index: {}]   ;;  %s2056_s7 = inlined_call_operand.hbm [shape: f32[128,256], index: 7, kind: input, shape index: {}]   ;;  %s2057_s8 = inlined_call_operand.hbm [shape: f32[16,128], index: 8, kind: output, shape index: {}]  }
   0x1   :  { %2062 = sst [smem:[#allocation20_spill]] %s2050_s1 }
   0x2   :  { %2063 = sst [smem:[#allocation21_spill]] %s2052_s3 }
   0x3   :  { %2064 = sst [smem:[#allocation22_spill]] %s2053_s4 }
   0x4   :  { %13 = vsyncpa [#allocation3], 0 }
   0x5   :  { %15 = vsyncpa [#allocation3 + $0x1], 0 }
   0x6   :  { %16 = vsyncpa [#allocation6], 0 }
   0x7   :  { %17 = vsyncpa [#allocation9], 0 }
   0x8   :  { %18 = vsyncpa [#allocation12], 0 }
   0x9   :  { %19 = vsyncpa [#allocation4], 0 }
   0xa   :  { %21 = vsyncpa [#allocation4 + $0x1], 0  ;;  %s1747_s27 = smov 0   ;;  %s1749_s28 = smov 0  }
   0xb   :  { %s1751_s29 = smov 0   ;;  %s1753_s30 = smov 0  }
   0xc LB: > { %s1688_s9 = smov [#allocation5]   ;;  %s1768_s11 = sadd.s32 4294967295, %s1686_s30   ;;  %s1686_s30 = sphi %s1753_s30, %s2090_s30   ;;  %s1682_s29 = sphi %s1751_s29, %s2089_s29   ;;  %s1678_s28 = sphi %s1749_s28, %s2088_s28   ;;  %s1674_s27 = sphi %s1747_s27, %s2087_s27  }
   0xd   : > { %s243_s10 = sshll.u32 %s1688_s9, 4  ;;  %p1180_p0 = scmp.ge.s32.totalorder %s1686_s30, 1  ;;  %s244_s10 = int_to_ptr.vmem [resolvable:$true] %s243_s10 }
   0xe   : > { %p2058_p1 = scmp.eq.s32.totalorder %s1768_s11, 0  ;;  %p231_p2 = scmp.lt.s32.totalorder %s1686_s30, 3 }
   0xf   : > { %s1689_s13 = smov [#allocation8]   ;;  %s1690_s16 = smov [#allocation11]  }
  0x10   : > { %p1773_p3 = pnand %p1180_p0, %p231_p2  ;;  %s272_s14 = sshll.u32 %s1689_s13, 4  ;;  %s273_s14 = int_to_ptr.vmem [resolvable:$true] %s272_s14 }
  0x11   : > { %s298_s17 = sshll.u32 %s1690_s16, 4  ;;  %s1437_s19 = scalar_lea.vmem %s244_s10, 4096  ;;  %s299_s17 = int_to_ptr.vmem [resolvable:$true] %s298_s17 }
  0x12   : > { %s2065_s12 = scalar_select %p1773_p3, 1, 0 }
  0x13   : > { %p1337_p5 = pneg %p1773_p3  ;;  %p1438_p8 = scmp.ne.s32.totalorder %s244_s10, %s1437_s19 }
  0x14   : > { %p1445_p11 = scmp.lt.s32.totalorder %s244_s10, %s244_s10  ;;  %p1446_p12 = scmp.lt.s32.totalorder %s1437_s19, %s1437_s19 }
  0x15   : > { %p1782_p6 = pnand %p1337_p5, %p2058_p1 }
  0x16   : > { %p1447_p13 = por %p1446_p12, %p1445_p11 }
  0x17   : > { %p1788_p7 = pneg %p1782_p6 }
  0x19   : > { %p1440_p9 = pnand %p1438_p8, %p1788_p7 }
  0x1b   : > { %p1441_p10 = pneg %p1440_p9 }
  0x1d   : > { %p1448_p0 = pnand %p1447_p13, %p1441_p10 }
  0x1f   : > { %1451 = shalt.err (!%p1448_p0)
}
  0x20   : > { %s1691_s20 = smov 256   ;;  %s1692_s21 = smov 16  }
  0x21   : > { %s2068_s1 = sld [smem:[#allocation20_spill]]  ;;  %s1463_s24 = scalar_lea.vmem %s273_s14, 4096 }
  0x22   : > { %p1464_p2 = scmp.ne.s32.totalorder %s273_s14, %s1463_s24  ;;  %p1471_p9 = scmp.lt.s32.totalorder %s273_s14, %s273_s14 }
  0x23   : > { %p1472_p10 = scmp.lt.s32.totalorder %s1463_s24, %s1463_s24 }
  0x24   : > { %p1466_p5 = pnand %p1464_p2, %p1788_p7 }
  0x25   : > { %p1473_p11 = por %p1472_p10, %p1471_p9 }
  0x26   : > { %p1467_p8 = pneg %p1466_p5 }
  0x27   : > { %1340 = dma.hbm_to_vmem [thread:$0]  (!%p1782_p6), %s2068_s1, 4096, %s244_s10, [#allocation6], %s1691_s20, %s1691_s20, %s1692_s21  }
  0x28   : > { %p1474_p12 = pnand %p1473_p11, %p1467_p8 }
  0x2a   : > { %1477 = shalt.err (!%p1474_p12)
}
  0x2b   : > { %s2069_s4 = sld [smem:[#allocation22_spill]]  ;;  %s1489_s9 = scalar_lea.vmem %s299_s17, 2048 }
  0x2c   : > { %p1490_p13 = scmp.ne.s32.totalorder %s299_s17, %s1489_s9  ;;  %p1497_p5 = scmp.lt.s32.totalorder %s299_s17, %s299_s17 }
  0x2d   : > { %p1498_p9 = scmp.lt.s32.totalorder %s1489_s9, %s1489_s9 }
  0x2e   : > { %p1492_p0 = pnand %p1490_p13, %p1788_p7 }
  0x2f   : > { %p1499_p8 = por %p1498_p9, %p1497_p5 }
  0x30   : > { %p1493_p2 = pneg %p1492_p0 }
  0x31   : > { %1346 = dma.hbm_to_vmem [thread:$0]  (!%p1782_p6), %s2069_s4, 4096, %s273_s14, [#allocation9], %s1691_s20, %s1691_s20, %s1692_s21  }
  0x32   : > { %p1500_p10 = pnand %p1499_p8, %p1493_p2 }
  0x34   : > { %1503 = shalt.err (!%p1500_p10)
}
  0x35   : > { %s1693_s10 = smov 128   ;;  %s1694_s13 = smov 8  }
  0x36   : > { %1352 = dma.hbm_to_vmem [thread:$0]  (!%p1782_p6), %s2055_s6, 2048, %s299_s17, [#allocation12], %s1693_s10, %s1693_s10, %s1694_s13  }
  0x37   : > { %s1695_s19 = smov [#allocation7]   ;;  %s1696_s23 = smov [#allocation10]  }
  0x38   : > { %s259_s22 = sshll.u32 %s1695_s19, 4  ;;  %s285_s24 = sshll.u32 %s1696_s23, 4  ;;  %s260_s22 = int_to_ptr.vmem [resolvable:$true] %s259_s22  ;;  %s286_s24 = int_to_ptr.vmem [resolvable:$true] %s285_s24 }
  0x39   : > { %s1515_s25 = scalar_lea.vmem %s260_s22, 4096  ;;  %p1523_p0 = scmp.lt.s32.totalorder %s260_s22, %s260_s22 }
  0x3a   : > { %p1516_p11 = scmp.ne.s32.totalorder %s260_s22, %s1515_s25  ;;  %p1524_p2 = scmp.lt.s32.totalorder %s1515_s25, %s1515_s25 }
  0x3c   : > { %p1518_p12 = pnand %p1516_p11, %p1788_p7  ;;  %p1525_p5 = por %p1524_p2, %p1523_p0 }
  0x3e   : > { %p1519_p13 = pneg %p1518_p12 }
  0x40   : > { %p1526_p9 = pnand %p1525_p5, %p1519_p13 }
  0x42   : > { %1529 = shalt.err (!%p1526_p9)
}
  0x43   : > { %s2070_s3 = sld [smem:[#allocation21_spill]]  ;;  %s1541_s9 = scalar_lea.vmem %s286_s24, 2048 }
  0x44   : > { %p1542_p8 = scmp.ne.s32.totalorder %s286_s24, %s1541_s9  ;;  %p1549_p12 = scmp.lt.s32.totalorder %s286_s24, %s286_s24 }
  0x45   : > { %p1550_p0 = scmp.lt.s32.totalorder %s1541_s9, %s1541_s9 }
  0x46   : > { %p1544_p10 = pnand %p1542_p8, %p1788_p7 }
  0x47   : > { %p1551_p13 = por %p1550_p0, %p1549_p12 }
  0x48   : > { %p1545_p11 = pneg %p1544_p10 }
  0x49   : > { %1343 = dma.hbm_to_vmem [thread:$0]  (!%p1782_p6), %s2070_s3, 4096, %s260_s22, [#allocation6], %s1691_s20, %s1691_s20, %s1692_s21  }
  0x4a   : > { %p1552_p2 = pnand %p1551_p13, %p1545_p11 }
  0x4c   : > { %1555 = shalt.err (!%p1552_p2)
}
  0x4d   : > { %1349 = dma.hbm_to_vmem [thread:$0]  (!%p1782_p6), %s2054_s5, 2048, %s286_s24, [#allocation9], %s1693_s10, %s1693_s10, %s1694_s13  }
  0x4e   : > { %s1697_s19 = smov [#allocation13]  }
  0x4f   : > { %s311_s22 = sshll.u32 %s1697_s19, 4  ;;  %s312_s22 = int_to_ptr.vmem [resolvable:$true] %s311_s22 }
  0x50   : > { %s1567_s23 = scalar_lea.vmem %s312_s22, 4096  ;;  %p1575_p10 = scmp.lt.s32.totalorder %s312_s22, %s312_s22 }
  0x51   : > { %p1568_p5 = scmp.ne.s32.totalorder %s312_s22, %s1567_s23  ;;  %p1576_p11 = scmp.lt.s32.totalorder %s1567_s23, %s1567_s23 }
  0x53   : > { %p1570_p9 = pnand %p1568_p5, %p1788_p7  ;;  %p1577_p12 = por %p1576_p11, %p1575_p10 }
  0x55   : > { %p1571_p8 = pneg %p1570_p9 }
  0x57   : > { %p1578_p0 = pnand %p1577_p12, %p1571_p8 }
  0x59   : > { %1581 = shalt.err (!%p1578_p0)
}
  0x5a   : > { %1355 = dma.hbm_to_vmem [thread:$0]  (!%p1782_p6), %s2056_s7, 4096, %s312_s22, [#allocation12], %s1691_s20, %s1691_s20, %s1692_s21  }
  0x5b   : > { %s1179_s15 = sadd.s32 4294967294, %s1686_s30   ;;  %s1854_s18 = sadd.s32 1, %s1686_s30  }
  0x5c   : > { %s31_s13 = ssub.s32 %s1686_s30, %s1854_s18  ;;  %s34_s24 = sadd.s32 1, %s1682_s29 }
  0x5d   : > { %p32_p7 = scmp.eq.s32.totalorder %s31_s13, 0  ;;  %p41_p13 = scmp.ne.s32.totalorder %s1682_s29, %s1678_s28 }
  0x5e   : > { %p42_p2 = scmp.eq.s32.totalorder %s1686_s30, 0  ;;  %p47_p5 = scmp.ne.s32.totalorder %s1678_s28, %s1674_s27 }
  0x5f   : > { %s1865_s17 = scalar_select %p32_p7, %s1682_s29, %s34_s24  }
  0x60   : > { %p1867_p9 = por %p42_p2, %p41_p13  ;;  %p1873_p6 = por %p2058_p1, %p47_p5 }
  0x61   : > { %p218_p8 = scmp.eq.s32.totalorder %s1768_s11, 1  ;;  %p224_p10 = scmp.eq.s32.totalorder %s1179_s15, 1 }
  0x62   : > { %s2072_s20 = scalar_select %p1873_p6, 1, 0 }
  0x63   : > { %p1370_p11 = scmp.lt.s32.totalorder %s1686_s30, 2  ;;  %s325_s21 = sand.u32 1, %s1682_s29  }
  0x64   : > { %p1880_p12 = por %p218_p8, %p41_p13  ;;  %p1884_p0 = por %p224_p10, %p47_p5 }
  0x65   : > { %s1188_s16 = sshll.u32 %s325_s21, 3  ;;  %s1189_s19 = sshll.u32 %s1686_s30, 7 }
  0x66   : > { %s2073_s9 = scalar_select %p1880_p12, 1, 0 }
  0x67   : > { %s2074_s14 = scalar_select %p1884_p0, 1, 0 }
  0x68   : > { %s1892_s25 = scalar_lea.hbm %s2049_s0, %s1189_s19  ;;  %s329_s10 = scalar_lea.vmem [#allocation2], %s1188_s16 }
  0x69   : > { %s336_s15 = sshll.u32 %s329_s10, 4  ;;  %p1896_p7 = pnand %p1370_p11, %p1867_p9  ;;  %s337_s15 = int_to_ptr.vmem [resolvable:$true] %s336_s15 }
  0x6a   : > { %s326_s24 = scalar_lea.sflag [#allocation3], %s325_s21  ;;  %s1582_s1 = scalar_lea.hbm %s1892_s25, 128 }
  0x6b   : > { %p1583_p13 = scmp.ne.s32.totalorder %s1892_s25, %s1582_s1  ;;  %p1584_p2 = pneg %p1896_p7 }
  0x6c   : > { %s1587_s23 = scalar_lea.hbm %s2049_s0, 256  ;;  %p1588_p10 = scmp.lt.s32.totalorder %s1892_s25, %s2049_s0 }
  0x6d   : > { %p1585_p5 = pnand %p1584_p2, %p1583_p13  ;;  %p1589_p9 = scmp.lt.s32.totalorder %s1587_s23, %s1582_s1 }
  0x6f   : > { %p1586_p8 = pneg %p1585_p5  ;;  %p1590_p11 = por %p1589_p9, %p1588_p10 }
  0x71   : > { %p1591_p4 = pnand %p1590_p11, %p1586_p8 }
  0x73   : > { %1594 = shalt.err (!%p1591_p4)
}
  0x74   : > { %s1595_s26 = scalar_lea.vmem %s337_s15, 128  ;;  %s1698_s21 = smov [#allocation2]  }
  0x75   : > { %p1596_p1 = scmp.ne.s32.totalorder %s337_s15, %s1595_s26  ;;  %s1600_s3 = sshll.u32 %s1698_s21, 4  ;;  %s1601_s3 = int_to_ptr.vmem [resolvable:$false] %s1600_s3 }
  0x76   : > { %s1602_s4 = scalar_lea.vmem %s1601_s3, 256  ;;  %p1603_p13 = scmp.lt.s32.totalorder %s337_s15, %s1601_s3 }
  0x77   : > { %p1598_p0 = pnand %p1596_p1, %p1584_p2  ;;  %p1604_p5 = scmp.lt.s32.totalorder %s1602_s4, %s1595_s26 }
  0x79   : > { %p1599_p12 = pneg %p1598_p0  ;;  %p1605_p6 = por %p1604_p5, %p1603_p13 }
  0x7b   : > { %p1606_p3 = pnand %p1605_p6, %p1599_p12 }
  0x7d   : > { %1609 = shalt.err (!%p1606_p3)
}
  0x7e   : > { %1359 = dma.hbm_to_vmem [thread:$0]  (!%p1896_p7), %s1892_s25, 128, %s337_s15, %s326_s24  }
  0x7f   : > { %p2076_p8 = scmp.ne.s32.totalorder %s2065_s12, 0 }
  0x80   : > { %s1917_s1 = sand.u32 (!%p2076_p8), 1, %s1678_s28   ;;  %p2077_p1 = scmp.ne.s32.totalorder (!%p2076_p8), %s2072_s20, 0 }
  0x81   : > { %345 = sbr.rel (%p2076_p8) target bundleno = 855 (0x357), region = 52  ;;  %s1191_s19 = sshll.u32 (!%p2076_p8), %s1917_s1, 3 }
  0x82   : > { %s348_s3 = scalar_lea.sflag (!%p2076_p8), [#allocation3], %s1917_s1  ;;  %s1923_s4 = scalar_lea.vmem (!%p2076_p8), [#allocation2], %s1191_s19 }
  0x86   : > { %1653 = dma.done.wait (%p2077_p1), %s348_s3, 128  }
  0x87   : > { %1655 = vsyncadd (%p2077_p1), %s348_s3, 4294967168  ;;  %p2078_p3 = scmp.eq.s32.totalorder %s1768_s11, 0 }
  0x89   : > { %1657 = dma.done.wait (%p2078_p3), [#allocation6], 8192   ;;  %p2079_p4 = pmov %p2078_p3 }
  0x8a   : > { %p2080_p6 = pmov %p2078_p3 }
  0x8b   : > { %1659 = vsyncadd (%p2079_p4), [#allocation6], 4294959104 }
  0x8c   : > { %1661 = dma.done.wait (%p2080_p6), [#allocation9], 6144   ;;  %p2081_p12 = pmov %p2078_p3 }
  0x8d   : > { %p2082_p0 = pmov %p2078_p3 }
  0x8e   : > { %1663 = vsyncadd (%p2081_p12), [#allocation9], 4294961152 }
  0x8f   : > { %1665 = dma.done.wait (%p2082_p0), [#allocation12], 6144   ;;  %p2083_p7 = pmov %p2082_p0 }
  0x90   : > { %v1699_v0 = vmov 0.0   ;;  %v440_v1 = vld [vmem:[#allocation5 + $0xf8] sm:$0xff]  ;;  %v439_v2 = vld [vmem:[#allocation5 + $0xf0] sm:$0xff]  ;;  %v438_v3 = vld [vmem:[#allocation5 + $0xe8] sm:$0xff]  ;;  %vm1700_vm1 = vmmov 0   ;;  %s1202_s13 = sshll.u32 %s1768_s11, 7 }
  0x91   : > { %1667 = vsyncadd (%p2083_p7), [#allocation12], 4294961152  ;;  %505 = vmatprep.mubr.f32.mxu0 %v1699_v0  ;;  %635 = vmatprep.mubr.f32.mxu1 %v1699_v0  ;;  %v437_v4 = vld [vmem:[#allocation5 + $0xe0] sm:$0xff]  ;;  %v436_v5 = vld [vmem:[#allocation5 + $0xd8] sm:$0xff]  ;;  %s407_s24 = scalar_lea.vmem [#allocation14], %s1191_s19  ;;  %s1050_s10 = scalar_lea.hbm %s2057_s8, %s1202_s13 }
  0x92   : > { %441 = vmatprep.subr.mxu0 %v440_v1  ;;  %v435_v6 = vld [vmem:[#allocation5 + $0xd0] sm:$0xff]  ;;  %v434_v7 = vld [vmem:[#allocation5 + $0xc8] sm:$0xff]  ;;  %v433_v8 = vld [vmem:[#allocation5 + $0xc0] sm:$0xff]  ;;  %s1052_s22 = sshll.u32 %s407_s24, 4  ;;  %s1039_s26 = scalar_lea.sflag [#allocation4], %s1917_s1  ;;  %s1053_s22 = int_to_ptr.vmem [resolvable:$true] %s1052_s22 }
  0x93   : > { %442 = vmatpush1.msra.mxu0 %v439_v2  ;;  %v432_v9 = vld [vmem:[#allocation5 + $0xb8] sm:$0xff]  ;;  %v431_v10 = vld [vmem:[#allocation5 + $0xb0] sm:$0xff]  ;;  %v430_v11 = vld [vmem:[#allocation5 + $0xa8] sm:$0xff]  ;;  %s1610_s21 = scalar_lea.vmem %s1053_s22, 128  ;;  %p2084_p10 = scmp.ne.s32.totalorder %s2073_s9, 0 }
  0x94   : > { %443 = vmatprep.subr.mxu0 %v438_v3  ;;  %v429_v12 = vld [vmem:[#allocation5 + $0xa0] sm:$0xff]  ;;  %v428_v13 = vld [vmem:[#allocation5 + $0x98] sm:$0xff]  ;;  %v427_v15 = vld [vmem:[#allocation5 + $0x90] sm:$0xff]  ;;  %p1611_p2 = scmp.ne.s32.totalorder %s1053_s22, %s1610_s21  ;;  %s1701_s11 = smov [#allocation14]  }
  0x95   : > { %444 = vmatpush1.msra.mxu0 %v437_v4  ;;  %v1944_v14 = vld [vmem:[%s1923_s4] sm:$0xff]  ;;  %v426_v19 = vld [vmem:[#allocation5 + $0x88] sm:$0xff]  ;;  %v425_v21 = vld [vmem:[#allocation5 + $0x80] sm:$0xff]  ;;  %s1614_s19 = sshll.u32 %s1701_s11, 4  ;;  %s1615_s19 = int_to_ptr.vmem [resolvable:$false] %s1614_s19 }
  0x96   : > { %445 = vmatprep.subr.mxu0 %v436_v5  ;;  %v1948_v16 = vmul.f32 %v1944_v14, %v1944_v14  ;;  %v570_v17 = vld [vmem:[#allocation7 + $0xf8] sm:$0xff]  ;;  %v569_v18 = vld [vmem:[#allocation7 + $0xf0] sm:$0xff]  ;;  %v568_v20 = vld [vmem:[#allocation7 + $0xe8] sm:$0xff]  ;;  %p1612_p9 = pnand %p1611_p2, %p2084_p10  ;;  %s1616_s3 = scalar_lea.vmem %s1615_s19, 256 }
  0x97   : > { %446 = vmatpush1.msra.mxu0 %v435_v6  ;;  %571 = vmatprep.subr.mxu1 %v570_v17  ;;  %v567_v22 = vld [vmem:[#allocation7 + $0xe0] sm:$0xff]  ;;  %v424_v23 = vld [vmem:[#allocation5 + $0x78] sm:$0xff]  ;;  %v423_v25 = vld [vmem:[#allocation5 + $0x70] sm:$0xff]  ;;  %p1617_p13 = scmp.lt.s32.totalorder %s1053_s22, %s1615_s19  ;;  %p1618_p5 = scmp.lt.s32.totalorder %s1616_s3, %s1610_s21 }
  0x98   : > { %447 = vmatprep.subr.mxu0 %v434_v7  ;;  %513 = vadd.xlane.f32.xlu0 %v1948_v16  ;;  %v566_v24 = vld [vmem:[#allocation7 + $0xd8] sm:$0xff]  ;;  %v565_v26 = vld [vmem:[#allocation7 + $0xd0] sm:$0xff]  ;;  %v422_v27 = vld [vmem:[#allocation5 + $0x68] sm:$0xff]  ;;  %p1613_p11 = pneg %p1612_p9 }
  0x99   : > { %448 = vmatpush1.msra.mxu0 %v433_v8  ;;  %572 = vmatpush1.msra.mxu1 %v569_v18  ;;  %v564_v28 = vld [vmem:[#allocation7 + $0xc8] sm:$0xff]  ;;  %v421_v29 = vld [vmem:[#allocation5 + $0x60] sm:$0xff]  ;;  %v420_v30 = vld [vmem:[#allocation5 + $0x58] sm:$0xff]  ;;  %p1619_p8 = por %p1618_p5, %p1617_p13 }
  0x9a   : > { %449 = vmatprep.subr.mxu0 %v432_v9  ;;  %573 = vmatprep.subr.mxu1 %v568_v20  ;;  %v419_v31 = vld [vmem:[#allocation5 + $0x50] sm:$0xff]  ;;  %v418_v32 = vld [vmem:[#allocation5 + $0x48] sm:$0xff]  ;;  %v417_v33 = vld [vmem:[#allocation5 + $0x40] sm:$0xff] }
  0x9b   : > { %450 = vmatpush1.msra.mxu0 %v431_v10  ;;  %574 = vmatpush1.msra.mxu1 %v567_v22  ;;  %v416_v34 = vld [vmem:[#allocation5 + $0x38] sm:$0xff]  ;;  %v415_v35 = vld [vmem:[#allocation5 + $0x30] sm:$0xff]  ;;  %v414_v36 = vld [vmem:[#allocation5 + $0x28] sm:$0xff]  ;;  %p1620_p1 = pnand %p1619_p8, %p1613_p11 }
  0x9c   : > { %451 = vmatprep.subr.mxu0 %v430_v11  ;;  %575 = vmatprep.subr.mxu1 %v566_v24  ;;  %v413_v37 = vld [vmem:[#allocation5 + $0x20] sm:$0xff]  ;;  %v412_v38 = vld [vmem:[#allocation5 + $0x18] sm:$0xff]  ;;  %v411_v39 = vld [vmem:[#allocation5 + $0x10] sm:$0xff] }
  0x9d   : > { %452 = vmatpush1.msra.mxu0 %v429_v12  ;;  %576 = vmatpush1.msra.mxu1 %v565_v26  ;;  %v410_v40 = vld [vmem:[#allocation5 + $0x8] sm:$0xff]  ;;  %v409_v41 = vld [vmem:[#allocation5] sm:$0xff]  ;;  %v673_v42 = vld [vmem:[#allocation8 + $0xf8] sm:$0xff] }
  0x9e   : > { %453 = vmatprep.subr.mxu0 %v428_v13  ;;  %577 = vmatprep.subr.mxu1 %v564_v28  ;;  %v672_v43 = vld [vmem:[#allocation8 + $0xf0] sm:$0xff]  ;;  %v671_v44 = vld [vmem:[#allocation8 + $0xe8] sm:$0xff]  ;;  %v670_v45 = vld [vmem:[#allocation8 + $0xe0] sm:$0xff] }
  0x9f   : > { %454 = vmatpush1.msra.mxu0 %v427_v15  ;;  %v563_v46 = vld [vmem:[#allocation7 + $0xc0] sm:$0xff]  ;;  %v669_v47 = vld [vmem:[#allocation8 + $0xd8] sm:$0xff]  ;;  %v668_v49 = vld [vmem:[#allocation8 + $0xd0] sm:$0xff] }
  0xa0   : > { %455 = vmatprep.subr.mxu0 %v426_v19  ;;  %578 = vmatpush1.msra.mxu1 %v563_v46  ;;  %v562_v48 = vld [vmem:[#allocation7 + $0xb8] sm:$0xff]  ;;  %v561_v50 = vld [vmem:[#allocation7 + $0xb0] sm:$0xff]  ;;  %v667_v51 = vld [vmem:[#allocation8 + $0xc8] sm:$0xff] }
  0xa1   : > { %456 = vmatpush1.msra.mxu0 %v425_v21  ;;  %579 = vmatprep.subr.mxu1 %v562_v48  ;;  %v560_v52 = vld [vmem:[#allocation7 + $0xa8] sm:$0xff]  ;;  %v666_v53 = vld [vmem:[#allocation8 + $0xc0] sm:$0xff]  ;;  %v665_v55 = vld [vmem:[#allocation8 + $0xb8] sm:$0xff] }
  0xa2   : > { %457 = vmatprep.subr.mxu0 %v424_v23  ;;  %580 = vmatpush1.msra.mxu1 %v561_v50  ;;  %v559_v54 = vld [vmem:[#allocation7 + $0xa0] sm:$0xff]  ;;  %v558_v56 = vld [vmem:[#allocation7 + $0x98] sm:$0xff]  ;;  %v664_v57 = vld [vmem:[#allocation8 + $0xb0] sm:$0xff] }
  0xa3   : > { %458 = vmatpush1.msra.mxu0 %v423_v25  ;;  %581 = vmatprep.subr.mxu1 %v560_v52  ;;  %v557_v58 = vld [vmem:[#allocation7 + $0x90] sm:$0xff]  ;;  %v663_v59 = vld [vmem:[#allocation8 + $0xa8] sm:$0xff]  ;;  %v662_v61 = vld [vmem:[#allocation8 + $0xa0] sm:$0xff] }
  0xa4   : > { %459 = vmatprep.subr.mxu0 %v422_v27  ;;  %582 = vmatpush1.msra.mxu1 %v559_v54  ;;  %v556_v60 = vld [vmem:[#allocation7 + $0x88] sm:$0xff]  ;;  %v555_v62 = vld [vmem:[#allocation7 + $0x80] sm:$0xff]  ;;  %v661_v63 = vld [vmem:[#allocation8 + $0x98] sm:$0xff] }
  0xa5   : > { %460 = vmatpush1.msra.mxu0 %v421_v29  ;;  %583 = vmatprep.subr.mxu1 %v558_v56  ;;  %v554_v1 = vld [vmem:[#allocation7 + $0x78] sm:$0xff]  ;;  %v660_v2 = vld [vmem:[#allocation8 + $0x90] sm:$0xff]  ;;  %v659_v4 = vld [vmem:[#allocation8 + $0x88] sm:$0xff] }
  0xa6   : > { %461 = vmatprep.subr.mxu0 %v420_v30  ;;  %584 = vmatpush1.msra.mxu1 %v557_v58  ;;  %v553_v3 = vld [vmem:[#allocation7 + $0x70] sm:$0xff]  ;;  %v552_v5 = vld [vmem:[#allocation7 + $0x68] sm:$0xff]  ;;  %v658_v6 = vld [vmem:[#allocation8 + $0x80] sm:$0xff] }
  0xa7   : > { %462 = vmatpush1.msra.mxu0 %v419_v31  ;;  %585 = vmatprep.subr.mxu1 %v556_v60  ;;  %v551_v7 = vld [vmem:[#allocation7 + $0x60] sm:$0xff]  ;;  %v657_v8 = vld [vmem:[#allocation8 + $0x78] sm:$0xff]  ;;  %v656_v10 = vld [vmem:[#allocation8 + $0x70] sm:$0xff] }
  0xa8   : > { %463 = vmatprep.subr.mxu0 %v418_v32  ;;  %586 = vmatpush1.msra.mxu1 %v555_v62  ;;  %v550_v9 = vld [vmem:[#allocation7 + $0x58] sm:$0xff]  ;;  %v549_v11 = vld [vmem:[#allocation7 + $0x50] sm:$0xff]  ;;  %v655_v12 = vld [vmem:[#allocation8 + $0x68] sm:$0xff] }
  0xa9   : > { %464 = vmatpush1.msra.mxu0 %v417_v33  ;;  %587 = vmatprep.subr.mxu1 %v554_v1  ;;  %v548_v13 = vld [vmem:[#allocation7 + $0x48] sm:$0xff]  ;;  %v654_v15 = vld [vmem:[#allocation8 + $0x60] sm:$0xff]  ;;  %v653_v18 = vld [vmem:[#allocation8 + $0x58] sm:$0xff] }
  0xaa   : > { %465 = vmatprep.subr.mxu0 %v416_v34  ;;  %588 = vmatpush1.msra.mxu1 %v553_v3  ;;  %v547_v17 = vld [vmem:[#allocation7 + $0x40] sm:$0xff]  ;;  %v546_v19 = vld [vmem:[#allocation7 + $0x38] sm:$0xff]  ;;  %v652_v20 = vld [vmem:[#allocation8 + $0x50] sm:$0xff] }
  0xab   : > { %466 = vmatpush1.msra.mxu0 %v415_v35  ;;  %589 = vmatprep.subr.mxu1 %v552_v5  ;;  %v545_v21 = vld [vmem:[#allocation7 + $0x30] sm:$0xff]  ;;  %v651_v22 = vld [vmem:[#allocation8 + $0x48] sm:$0xff]  ;;  %v650_v24 = vld [vmem:[#allocation8 + $0x40] sm:$0xff] }
  0xac   : > { %467 = vmatprep.subr.mxu0 %v414_v36  ;;  %590 = vmatpush1.msra.mxu1 %v551_v7  ;;  %v544_v23 = vld [vmem:[#allocation7 + $0x28] sm:$0xff]  ;;  %v543_v25 = vld [vmem:[#allocation7 + $0x20] sm:$0xff]  ;;  %v649_v26 = vld [vmem:[#allocation8 + $0x38] sm:$0xff] }
  0xad   : > { %468 = vmatpush1.msra.mxu0 %v413_v37  ;;  %591 = vmatprep.subr.mxu1 %v550_v9  ;;  %v542_v27 = vld [vmem:[#allocation7 + $0x18] sm:$0xff]  ;;  %v648_v28 = vld [vmem:[#allocation8 + $0x30] sm:$0xff]  ;;  %v647_v30 = vld [vmem:[#allocation8 + $0x28] sm:$0xff] }
  0xae   : > { %469 = vmatprep.subr.mxu0 %v412_v38  ;;  %592 = vmatpush1.msra.mxu1 %v549_v11  ;;  %v541_v29 = vld [vmem:[#allocation7 + $0x10] sm:$0xff]  ;;  %v540_v31 = vld [vmem:[#allocation7 + $0x8] sm:$0xff]  ;;  %v646_v32 = vld [vmem:[#allocation8 + $0x20] sm:$0xff] }
  0xaf   : > { %470 = vmatpush1.msra.mxu0 %v411_v39  ;;  %593 = vmatprep.subr.mxu1 %v548_v13  ;;  %v539_v33 = vld [vmem:[#allocation7] sm:$0xff]  ;;  %v645_v34 = vld [vmem:[#allocation8 + $0x18] sm:$0xff]  ;;  %v644_v35 = vld [vmem:[#allocation8 + $0x10] sm:$0xff] }
  0xb0   : > { %471 = vmatprep.subr.mxu0 %v410_v40  ;;  %594 = vmatpush1.msra.mxu1 %v547_v17  ;;  %v643_v36 = vld [vmem:[#allocation8 + $0x8] sm:$0xff]  ;;  %v642_v37 = vld [vmem:[#allocation8] sm:$0xff]  ;;  %v1200_v48 = vld [vmem:[%s2051_s2 + $0x1] ss:$0 sm:$0xff] }
  0xb1   : > { %472 = vmatpush1.msra.mxu0 %v409_v41  ;;  %595 = vmatprep.subr.mxu1 %v546_v19  ;;  %v1199_v41 = vld [vmem:[%s2051_s2] ss:$0 sm:$0xff]  ;;  %v760_v54 = vld [vmem:[#allocation10 + $0x78] sm:$0xff]  ;;  %v757_v58 = vld [vmem:[#allocation10 + $0x60] sm:$0xff] }
  0xb2   : > { %506 = vmatmul.mubr.f32.vlgmr.msra.gmra.mxu0 %v1944_v14  ;;  %674 = vmatprep.subr.mxu0 %v673_v42  ;;  %v759_v56 = vld [vmem:[#allocation10 + $0x70] sm:$0xff]  ;;  %v753_v62 = vld [vmem:[#allocation10 + $0x40] sm:$0xff]  ;;  %v892_v9 = vld [vmem:[#allocation13 + $0xf8] sm:$0xff] }
  0xb3   : > { %675 = vmatpush1.msra.mxu0 %v672_v43  ;;  %738 = vmatprep.mubr.f32.mxu0 %v1699_v0  ;;  %v755_v60 = vld [vmem:[#allocation10 + $0x50] sm:$0xff]  ;;  %v749_v3 = vld [vmem:[#allocation10 + $0x20] sm:$0xff]  ;;  %v890_v11 = vld [vmem:[#allocation13 + $0xe8] sm:$0xff] }
  0xb4   : > { %676 = vmatprep.subr.mxu0 %v671_v44  ;;  %596 = vmatpush1.msra.mxu1 %v545_v21  ;;  %v751_v1 = vld [vmem:[#allocation10 + $0x30] sm:$0xff]  ;;  %v745_v7 = vld [vmem:[#allocation10] sm:$0xff]  ;;  %v860_v13 = vld [vmem:[#allocation11 + $0x78] sm:$0xff] }
  0xb5   : > { %677 = vmatpush1.msra.mxu0 %v670_v45  ;;  %597 = vmatprep.subr.mxu1 %v544_v23  ;;  %v526_v45 = vlaneseq  ;;  %v747_v5 = vld [vmem:[#allocation10 + $0x10] sm:$0xff]  ;;  %v858_v19 = vld [vmem:[#allocation11 + $0x68] sm:$0xff]  ;;  %v885_v21 = vld [vmem:[#allocation13 + $0xc0] sm:$0xff] }
  0xb6   : > { %678 = vmatprep.subr.mxu0 %v669_v47  ;;  %598 = vmatpush1.msra.mxu1 %v543_v25  ;;  %v859_v17 = vld [vmem:[#allocation11 + $0x70] sm:$0xff]  ;;  %v884_v23 = vld [vmem:[#allocation13 + $0xb8] sm:$0xff]  ;;  %v882_v25 = vld [vmem:[#allocation13 + $0xa8] sm:$0xff] }
  0xb7   : > { %679 = vmatpush1.msra.mxu0 %v668_v49  ;;  %599 = vmatprep.subr.mxu1 %v542_v27  ;;  %v527_v46 = vand.u32 127, %v526_v45  ;;  %v856_v27 = vld [vmem:[#allocation11 + $0x58] sm:$0xff]  ;;  %v850_v45 = vld [vmem:[#allocation11 + $0x28] sm:$0xff] }
  0xb8   : > { %680 = vmatprep.subr.mxu0 %v667_v51  ;;  %600 = vmatpush1.msra.mxu1 %v541_v29  ;;  %v879_v29 = vld [vmem:[#allocation13 + $0x90] sm:$0xff] }
  0xb9   : > { %681 = vmatpush1.msra.mxu0 %v666_v53  ;;  %601 = vmatprep.subr.mxu1 %v540_v31  ;;  %vm528_vm0 = vcmp.lt.s32.totalorder %v527_v46, 16  ;;  %v878_v31 = vld [vmem:[#allocation13 + $0x88] sm:$0xff]  ;;  %v868_v46 = vld [vmem:[#allocation13 + $0x38] sm:$0xff] }
  0xba   : > { %682 = vmatprep.subr.mxu0 %v665_v55  ;;  %602 = vmatpush1.msra.mxu1 %v539_v33  ;;  %v854_v33 = vld [vmem:[#allocation11 + $0x48] sm:$0xff] }
  0xbb   : > { %683 = vmatpush1.msra.mxu0 %v664_v57  ;;  %1239 = vmatprep.subr.mxu1 %v1699_v0  ;;  %v758_v57 = vld [vmem:[#allocation10 + $0x68] sm:$0xff] }
  0xbc   : > { %684 = vmatprep.subr.mxu0 %v663_v59  ;;  %v756_v59 = vld [vmem:[#allocation10 + $0x58] sm:$0xff] }
  0xbd   : > { %685 = vmatpush1.msra.mxu0 %v662_v61  ;;  %v754_v61 = vld [vmem:[#allocation10 + $0x48] sm:$0xff] }
  0xbe   : > { %686 = vmatprep.subr.mxu0 %v661_v63  ;;  %v752_v63 = vld [vmem:[#allocation10 + $0x38] sm:$0xff] }
  0xbf   : > { %687 = vmatpush1.msra.mxu0 %v660_v2  ;;  %v750_v2 = vld [vmem:[#allocation10 + $0x28] sm:$0xff] }
  0xc0   : > { %688 = vmatprep.subr.mxu0 %v659_v4  ;;  %v748_v4 = vld [vmem:[#allocation10 + $0x18] sm:$0xff] }
  0xc1   : > { %689 = vmatpush1.msra.mxu0 %v658_v6  ;;  %v746_v6 = vld [vmem:[#allocation10 + $0x8] sm:$0xff] }
  0xc2   : > { %690 = vmatprep.subr.mxu0 %v657_v8 }
  0xc3   : > { %691 = vmatpush1.msra.mxu0 %v656_v10  ;;  %v891_v10 = vld [vmem:[#allocation13 + $0xf0] sm:$0xff] }
  0xc4   : > { %692 = vmatprep.subr.mxu0 %v655_v12  ;;  %v889_v12 = vld [vmem:[#allocation13 + $0xe0] sm:$0xff] }
  0xc5   : > { %693 = vmatpush1.msra.mxu0 %v654_v15  ;;  %v888_v15 = vld [vmem:[#allocation13 + $0xd8] sm:$0xff] }
  0xc6   : > { %694 = vmatprep.subr.mxu0 %v653_v18  ;;  %v887_v18 = vld [vmem:[#allocation13 + $0xd0] sm:$0xff] }
  0xc7   : > { %695 = vmatpush1.msra.mxu0 %v652_v20  ;;  %v886_v20 = vld [vmem:[#allocation13 + $0xc8] sm:$0xff] }
  0xc8   : > { %696 = vmatprep.subr.mxu0 %v651_v22  ;;  %v857_v22 = vld [vmem:[#allocation11 + $0x60] sm:$0xff] }
  0xc9   : > { %697 = vmatpush1.msra.mxu0 %v650_v24  ;;  %v883_v24 = vld [vmem:[#allocation13 + $0xb0] sm:$0xff] }
  0xca   : > { %698 = vmatprep.subr.mxu0 %v649_v26  ;;  %v881_v26 = vld [vmem:[#allocation13 + $0xa0] sm:$0xff] }
  0xcb   : > { %699 = vmatpush1.msra.mxu0 %v648_v28  ;;  %v880_v28 = vld [vmem:[#allocation13 + $0x98] sm:$0xff] }
  0xcc   : > { %700 = vmatprep.subr.mxu0 %v647_v30  ;;  %v855_v30 = vld [vmem:[#allocation11 + $0x50] sm:$0xff] }
  0xcd   : > { %701 = vmatpush1.msra.mxu0 %v646_v32  ;;  %v877_v32 = vld [vmem:[#allocation13 + $0x80] sm:$0xff] }
  0xce   : > { %702 = vmatprep.subr.mxu0 %v645_v34  ;;  %v876_v34 = vld [vmem:[#allocation13 + $0x78] sm:$0xff] }
  0xcf   : > { %703 = vmatpush1.msra.mxu0 %v644_v35  ;;  %v875_v35 = vld [vmem:[#allocation13 + $0x70] sm:$0xff] }
  0xd0   : > { %704 = vmatprep.subr.mxu0 %v643_v36  ;;  %v853_v36 = vld [vmem:[#allocation11 + $0x40] sm:$0xff] }
  0xd1   : > { %705 = vmatpush1.msra.mxu0 %v642_v37  ;;  %v874_v37 = vld [vmem:[#allocation13 + $0x68] sm:$0xff] }
  0xd2   : > { %893 = vmatprep.subr.mxu0 %v892_v9 }
 0x121   : > { %v514_v39 = vpop.xlane.xlu0 %513 }
 0x172   : > { %v507_v38 = vpop.f32.mrf.mxu0 }
 0x173   : > { %v517_v40 = vmul.f32 2.0, %v507_v38  ;;  %v873_v38 = vld [vmem:[#allocation13 + $0x60] sm:$0xff] }
 0x174   : > { %v509_v47 = vpop.f32.mrf.mxu0 }
 0x175   : > { %v518_v42 = vadd.f32 %v517_v40, %v514_v39  ;;  %v534_v50 = vadd.f32 %v1200_v48, %v509_v47  ;;  %v852_v39 = vld [vmem:[#allocation11 + $0x38] sm:$0xff]  ;;  %v867_v47 = vld [vmem:[#allocation13 + $0x30] sm:$0xff]  ;;  %v849_v48 = vld [vmem:[#allocation11 + $0x20] sm:$0xff] }
 0x176   : > { %v872_v40 = vld [vmem:[#allocation13 + $0x58] sm:$0xff] }
 0x177   : > { %v523_v43 = vadd.f32 %v1199_v41, %v518_v42  ;;  %v871_v41 = vld [vmem:[#allocation13 + $0x50] sm:$0xff] }
 0x178   : > { %v851_v42 = vld [vmem:[#allocation11 + $0x30] sm:$0xff] }
 0x179   : > { %v524_v44 = vmax.f32 %v523_v43, 1e-24  ;;  %v870_v43 = vld [vmem:[#allocation13 + $0x48] sm:$0xff] }
 0x17b   : > { %1422 = vrsqrt.f32 %v524_v44  ;;  %v869_v44 = vld [vmem:[#allocation13 + $0x40] sm:$0xff] }
 0x188   : > { %v1423_v49 = vpop.eup %1422 }
 0x189   : > { %v1960_v51 = vsel %vm528_vm0, %v1423_v49, 0.0  ;;  %v866_v49 = vld [vmem:[#allocation13 + $0x28] sm:$0xff] }
 0x18a   : > { %v1963_v52 = vmul.f32 %v534_v50, %v1960_v51  ;;  %v536_v53 = vmul.f32 %v1960_v51, %v1960_v51  ;;  %v865_v50 = vld [vmem:[#allocation13 + $0x20] sm:$0xff] }
 0x18c   : > { %v537_v55 = vmul.f32 %v1963_v52, %v1960_v51  ;;  %831 = vadd.xlane.f32.xlu0 %v536_v53  ;;  %636 = vmatmul.mubr.f32.vlgmr.msra.gmra.mxu1 %v536_v53  ;;  %v538_v8 = vmul.f32 %v1963_v52, %v1963_v52  ;;  %v848_v53 = vld [vmem:[#allocation11 + $0x18] sm:$0xff] }
 0x18d   : > { %1240 = vmatpush3.msra.mxu1 %v760_v54  ;;  %1271 = vmatprep.mubr.msk.f32.mxu1 %vm1700_vm1, %v1699_v0  ;;  %v864_v54 = vld [vmem:[#allocation13 + $0x18] sm:$0xff] }
 0x18e   : > { %1241 = vmatprep.subr.mxu1 %v1699_v0  ;;  %739 = vmatmul.mubr.f32.vlgmr.msra.gmra.mxu0 %v537_v55  ;;  %v863_v55 = vld [vmem:[#allocation13 + $0x10] sm:$0xff] }
 0x18f   : > { %1242 = vmatpush3.msra.mxu1 %v759_v56  ;;  %957 = vmatprep.mubr.f32.mxu0 %v1699_v0  ;;  %v847_v56 = vld [vmem:[#allocation11 + $0x10] sm:$0xff] }
 0x190   : > { %1243 = vmatprep.subr.mxu1 %v1699_v0  ;;  %894 = vmatpush1.msra.mxu0 %v891_v10 }
 0x191   : > { %1244 = vmatpush3.msra.mxu1 %v758_v57  ;;  %895 = vmatprep.subr.mxu0 %v890_v11  ;;  %v862_v57 = vld [vmem:[#allocation13 + $0x8] sm:$0xff] }
 0x192   : > { %1245 = vmatprep.subr.mxu1 %v1699_v0  ;;  %896 = vmatpush1.msra.mxu0 %v889_v12 }
 0x193   : > { %1246 = vmatpush3.msra.mxu1 %v757_v58  ;;  %897 = vmatprep.subr.mxu0 %v888_v15  ;;  %v861_v58 = vld [vmem:[#allocation13] sm:$0xff] }
 0x194   : > { %1247 = vmatprep.subr.mxu1 %v1699_v0  ;;  %898 = vmatpush1.msra.mxu0 %v887_v18 }
 0x195   : > { %1248 = vmatpush3.msra.mxu1 %v756_v59  ;;  %899 = vmatprep.subr.mxu0 %v886_v20  ;;  %v846_v59 = vld [vmem:[#allocation11 + $0x8] sm:$0xff] }
 0x196   : > { %1249 = vmatprep.subr.mxu1 %v1699_v0  ;;  %900 = vmatpush1.msra.mxu0 %v885_v21 }
 0x197   : > { %1250 = vmatpush3.msra.mxu1 %v755_v60  ;;  %901 = vmatprep.subr.mxu0 %v884_v23  ;;  %v845_v60 = vld [vmem:[#allocation11] sm:$0xff] }
 0x198   : > { %1251 = vmatprep.subr.mxu1 %v1699_v0  ;;  %902 = vmatpush1.msra.mxu0 %v883_v24 }
 0x199   : > { %1252 = vmatpush3.msra.mxu1 %v754_v61  ;;  %903 = vmatprep.subr.mxu0 %v882_v25 }
 0x19a   : > { %1253 = vmatprep.subr.mxu1 %v1699_v0  ;;  %904 = vmatpush1.msra.mxu0 %v881_v26 }
 0x19b   : > { %1254 = vmatpush3.msra.mxu1 %v753_v62  ;;  %905 = vmatprep.subr.mxu0 %v880_v28 }
 0x19c   : > { %1255 = vmatprep.subr.mxu1 %v1699_v0  ;;  %906 = vmatpush1.msra.mxu0 %v879_v29 }
 0x19d   : > { %1256 = vmatpush3.msra.mxu1 %v752_v63  ;;  %907 = vmatprep.subr.mxu0 %v878_v31 }
 0x19e   : > { %1257 = vmatprep.subr.mxu1 %v1699_v0  ;;  %908 = vmatpush1.msra.mxu0 %v877_v32 }
 0x19f   : > { %1258 = vmatpush3.msra.mxu1 %v751_v1  ;;  %909 = vmatprep.subr.mxu0 %v876_v34  ;;  %v834_v1 = vmul.f32 2.0, %v1944_v14 }
 0x1a0   : > { %1259 = vmatprep.subr.mxu1 %v1699_v0  ;;  %910 = vmatpush1.msra.mxu0 %v875_v35 }
 0x1a1   : > { %1260 = vmatpush3.msra.mxu1 %v750_v2  ;;  %911 = vmatprep.subr.mxu0 %v874_v37 }
 0x1a2   : > { %1261 = vmatprep.subr.mxu1 %v1699_v0  ;;  %912 = vmatpush1.msra.mxu0 %v873_v38 }
 0x1a3   : > { %1262 = vmatpush3.msra.mxu1 %v749_v3  ;;  %913 = vmatprep.subr.mxu0 %v872_v40 }
 0x1a4   : > { %1263 = vmatprep.subr.mxu1 %v1699_v0  ;;  %914 = vmatpush1.msra.mxu0 %v871_v41 }
 0x1a5   : > { %1264 = vmatpush3.msra.mxu1 %v748_v4  ;;  %915 = vmatprep.subr.mxu0 %v870_v43 }
 0x1a6   : > { %1265 = vmatprep.subr.mxu1 %v1699_v0  ;;  %916 = vmatpush1.msra.mxu0 %v869_v44 }
 0x1a7   : > { %1266 = vmatpush3.msra.mxu1 %v747_v5  ;;  %917 = vmatprep.subr.mxu0 %v868_v46 }
 0x1a8   : > { %1267 = vmatprep.subr.mxu1 %v1699_v0  ;;  %918 = vmatpush1.msra.mxu0 %v867_v47 }
 0x1a9   : > { %1268 = vmatpush3.msra.mxu1 %v746_v6  ;;  %919 = vmatprep.subr.mxu0 %v866_v49 }
 0x1aa   : > { %1269 = vmatprep.subr.mxu1 %v1699_v0  ;;  %920 = vmatpush1.msra.mxu0 %v865_v50 }
 0x1ab   : > { %1270 = vmatpush3.msra.mxu1 %v745_v7  ;;  %921 = vmatprep.subr.mxu0 %v864_v54 }
 0x1ac   : > { %1272 = vmatmul.mubr.f32.vlgmr.msra.gmra.mxu1 %v538_v8  ;;  %1274 = vmatprep.subr.mxu1 %v1699_v0 }
 0x1ad   : > { %1306 = vmatprep.mubr.msk.f32.mxu1 %vm1700_vm1, %v1699_v0  ;;  %1275 = vmatpush3.msra.mxu1 %v860_v13 }
 0x1ae   : > { %1276 = vmatprep.subr.mxu1 %v1699_v0  ;;  %922 = vmatpush1.msra.mxu0 %v863_v55 }
 0x1af   : > { %1277 = vmatpush3.msra.mxu1 %v859_v17  ;;  %923 = vmatprep.subr.mxu0 %v862_v57 }
 0x1b0   : > { %1278 = vmatprep.subr.mxu1 %v1699_v0  ;;  %924 = vmatpush1.msra.mxu0 %v861_v58 }
 0x1b1   : > { %1279 = vmatpush3.msra.mxu1 %v858_v19 }
 0x1b2   : > { %1280 = vmatprep.subr.mxu1 %v1699_v0 }
 0x1b3   : > { %1281 = vmatpush3.msra.mxu1 %v857_v22 }
 0x1b4   : > { %1282 = vmatprep.subr.mxu1 %v1699_v0 }
 0x1b5   : > { %1283 = vmatpush3.msra.mxu1 %v856_v27 }
 0x1b6   : > { %1284 = vmatprep.subr.mxu1 %v1699_v0 }
 0x1b7   : > { %1285 = vmatpush3.msra.mxu1 %v855_v30 }
 0x1b8   : > { %1286 = vmatprep.subr.mxu1 %v1699_v0 }
 0x1b9   : > { %1287 = vmatpush3.msra.mxu1 %v854_v33 }
 0x1ba   : > { %1288 = vmatprep.subr.mxu1 %v1699_v0 }
 0x1bb   : > { %1289 = vmatpush3.msra.mxu1 %v853_v36 }
 0x1bc   : > { %1290 = vmatprep.subr.mxu1 %v1699_v0 }
 0x1bd   : > { %1291 = vmatpush3.msra.mxu1 %v852_v39 }
 0x1be   : > { %1292 = vmatprep.subr.mxu1 %v1699_v0 }
 0x1bf   : > { %1293 = vmatpush3.msra.mxu1 %v851_v42 }
 0x1c0   : > { %1294 = vmatprep.subr.mxu1 %v1699_v0 }
 0x1c1   : > { %1295 = vmatpush3.msra.mxu1 %v850_v45 }
 0x1c2   : > { %1296 = vmatprep.subr.mxu1 %v1699_v0 }
 0x1c3   : > { %1297 = vmatpush3.msra.mxu1 %v849_v48 }
 0x1c4   : > { %1298 = vmatprep.subr.mxu1 %v1699_v0 }
 0x1c5   : > { %1299 = vmatpush3.msra.mxu1 %v848_v53 }
 0x1c6   : > { %1300 = vmatprep.subr.mxu1 %v1699_v0 }
 0x1c7   : > { %1301 = vmatpush3.msra.mxu1 %v847_v56 }
 0x1c8   : > { %1302 = vmatprep.subr.mxu1 %v1699_v0 }
 0x1c9   : > { %1303 = vmatpush3.msra.mxu1 %v846_v59 }
 0x1ca   : > { %1304 = vmatprep.subr.mxu1 %v1699_v0 }
 0x1cb   : > { %1305 = vmatpush3.msra.mxu1 %v845_v60 }
 0x215   : > { %v832_v4 = vpop.xlane.xlu0 %831 }
 0x216   : > { %v833_v7 = vmul.f32 %v832_v4, %v1948_v16 }
 0x24c   : > { %v637_v62 = vpop.f32.mrf.mxu1 }
 0x24e   : > { %v740_v61 = vpop.f32.mrf.mxu0  ;;  %v639_v6 = vpop.f32.mrf.mxu1 }
 0x24f   : > { %v835_v2 = vsub.f32 %v637_v62, %v740_v61 }
 0x250   : > { %v742_v63 = vpop.f32.mrf.mxu0 }
 0x251   : > { %v838_v3 = vmul.f32 2.0, %v742_v63  ;;  %v836_v5 = vmul.f32 %v835_v2, %v834_v1 }
 0x253   : > { %v839_v8 = vsub.f32 %v639_v6, %v838_v3  ;;  %v837_v10 = vadd.f32 %v836_v5, %v833_v7 }
 0x26c   : > { %v827_v9 = vpop.f32.mrf.mxu1 }
 0x26d   : > { %v840_v0 = vadd.f32 %v839_v8, %v827_v9 }
 0x26e   : > { %v1273_v11 = vpop.f32.mrf.mxu1 }
 0x26f   : > { %v841_v12 = vadd.f32 %v840_v0, %v837_v10 }
 0x271   : > { %v842_v13 = vmax.f32 %v841_v12, 1e-24 }
 0x273   : > { %1424 = vrsqrt.f32 %v842_v13 }
 0x280   : > { %v1425_v15 = vpop.eup %1424 }
 0x281   : > { %958 = vmatmul.mubr.f32.vlgmr.msra.gmra.mxu0 %v1425_v15  ;;  %v844_v17 = vmul.f32 %v1425_v15, %v1944_v14 }
 0x283   : > { %1307 = vmatmul.mubr.f32.vlgmr.msra.gmra.mxu1 %v844_v17 }
 0x341   : > { %v959_v18 = vpop.f32.mrf.mxu0 }
 0x343   : > { %v961_v19 = vpop.f32.mrf.mxu0  ;;  %v1030_v16 = vpop.f32.mrf.mxu1 }
 0x344   : > { %v1031_v20 = vadd.f32 %v1030_v16, %v959_v18  ;;  %v1035_v22 = vmul.f32 %v961_v19, %v1963_v52 }
 0x345   : > { %v1308_v21 = vpop.f32.mrf.mxu1 }
 0x346   : > { %v1034_v23 = vmul.f32 %v1031_v20, %v1960_v51 }
 0x348   : > { %v1036_v24 = vsub.f32 %v1034_v23, %v1035_v22 }
 0x34a   : > { %1037 = vst [vmem:[%s407_s24] sm:$0xff] %v1036_v24 }
 0x34b   : > { %1623 = shalt.err (!%p1620_p1)
}
 0x34c   : > { %s1624_s4 = scalar_lea.hbm %s1050_s10, 128  ;;  %s1628_s20 = scalar_lea.hbm %s2057_s8, 256 }
 0x34d   : > { %p1625_p3 = scmp.ne.s32.totalorder %s1050_s10, %s1624_s4  ;;  %p1629_p12 = scmp.lt.s32.totalorder %s1050_s10, %s2057_s8 }
 0x34e   : > { %p1630_p0 = scmp.lt.s32.totalorder %s1628_s20, %s1624_s4 }
 0x34f   : > { %p1626_p4 = pnand %p1625_p3, %p2084_p10 }
 0x350   : > { %p1631_p7 = por %p1630_p0, %p1629_p12 }
 0x351   : > { %p1627_p6 = pneg %p1626_p4 }
 0x353   : > { %p1632_p2 = pnand %p1631_p7, %p1627_p6 }
 0x355   : > { %1635 = shalt.err (!%p1632_p2)
}
 0x356   : > { %1335 = dma.vmem_to_hbm [thread:$0]  (%p2084_p10), %s1053_s22, 128, %s1050_s10, %s1039_s26  }
 0x357 PF: > { %s1064_s13 = sand.u32 1, %s1674_s27   ;;  %p2085_p9 = scmp.ne.s32.totalorder %s2074_s14, 0 }
 0x358   : > { %p2086_p11 = scmp.ge.s32.totalorder %s1686_s30, 2  ;;  %s1065_s24 = scalar_lea.sflag [#allocation4], %s1064_s13 }
 0x35a   : > { %p1361_p13 = pnand %p2086_p11, %p2085_p9 }
 0x35c   : > { %p1362_p5 = pneg %p1361_p13 }
 0x35e   : > { %1669 = dma.done.wait (%p1362_p5), %s1065_s24, 128  }
 0x35f   : > { %1671 = vsyncadd (%p1362_p5), %s1065_s24, 4294967168  ;;  %p24_p8 = scmp.ge.s32.totalorder %s1854_s18, 4   ;;  %s2087_s27 = smov %s1678_s28 }
 0x360   : > { %s2088_s28 = smov %s1682_s29  ;;  %s2089_s29 = smov %s1865_s17 }
 0x361   : > { %s2090_s30 = smov %s1854_s18  ;;  %26 = sbr.rel (!%p24_p8) target bundleno = 12 (0xc), region = 121 }
 0x366   :  { %1070 = vsyncpa [#allocation3], 1 }
 0x367   :  { %1072 = vsyncpa [#allocation3 + $0x1], 1 }
 0x368   :  { %1073 = vsyncpa [#allocation6], 1 }
 0x369   :  { %1074 = vsyncpa [#allocation9], 1 }
 0x36a   :  { %1075 = vsyncpa [#allocation12], 1 }
 0x36b   :  { %1076 = vsyncpa [#allocation4], 1 }
 0x36c   :  { %1078 = vsyncpa [#allocation4 + $0x1], 1 }

</bundles_post_ra>
